<compile_context>
chip_gen: v7x
topology: tpu7x:2x2x1
jax: 0.10.0
libtpu: 0.0.40
codegen_flags: <defaults>
</compile_context>

<pallas_src>
import functools

import jax
import jax.numpy as jnp
from jax.experimental import pallas as pl
from jax.experimental.pallas import tpu as pltpu

_P = 128                               # MXU tile width / lane count
_HIDDEN = (32, 64, 128, 64, 32, 8, 1)  # Net layer output widths (fc1..output)


def _round_up(n, m):
    return ((n + m - 1) // m) * m


def _padded_dims(dims):
    """Feature widths padded to >=16 (bf16 sublane packing; min tile (16,128))."""
    return tuple(_round_up(max(int(d), 1), 16) for d in dims)


def _batch_tiling(batch, max_tile_blocks=4):
    """Lane-axis batch tiling: tile_b is a multiple of 128 that divides the
    padded batch (no wasted trailing tile) and yields >=2 grid steps whenever
    there are >=2 lane blocks (so v7x's two TensorCores both get work)."""
    b_pad = _round_up(max(batch, 1), _P)
    nblk = b_pad // _P
    cap = min(max_tile_blocks, nblk if nblk < 2 else max(nblk // 2, 1))
    blk = 1
    for d in range(1, cap + 1):
        if nblk % d == 0:
            blk = d
    return blk * _P, b_pad


def _mlp_kernel(xt_ref, w_ref, b_ref, ot_ref, *, layer_shapes):
    """xt_ref: [F_pad, TILE_B] bf16 (batch on lanes), w_ref: [L,128,128] bf16
    (zero-padded W^T slab), b_ref: [L,128,1] f32, ot_ref: [OUT_pad, TILE_B] f32.

    Static Python loop over 7 layers (shapes differ per layer).  Padded weight
    rows/cols and padded bias rows are exactly 0, so padded activation rows stay
    0 through every ReLU.
    NOTE (v6e MRF): layers are serially dependent; larger batch tiles keep the
    MXU streaming long N per push and amortize the MRF pop latency."""
    n_layers = len(layer_shapes)
    h = xt_ref[...]
    for l, (out_p, in_p) in enumerate(layer_shapes):
        acc = jnp.dot(w_ref[l, :out_p, :in_p], h,
                      preferred_element_type=jnp.float32)
        acc = acc + b_ref[l, :out_p, :]
        if l < n_layers - 1:
            h = jnp.maximum(acc, 0.0).astype(jnp.bfloat16)
        else:
            ot_ref[...] = acc


def pack_params(params):
    """One-time packing (hoisted out of the call path): per-layer
    (W[in,out], b[1,out]) -> transposed, zero-padded slabs
    W^T[L,128,128] bf16 and b[L,128,1] f32."""
    n_layers = len(params)
    w_slab = jnp.zeros((n_layers, _P, _P), jnp.float32)
    b_slab = jnp.zeros((n_layers, _P, 1), jnp.float32)
    for l, (w, b) in enumerate(params):
        fan_in, fan_out = w.shape
        # Zero-padding invariant: padded rows/cols must remain exactly 0 so
        # padded activations stay 0 through ReLU.
        assert fan_in <= _P and fan_out <= _P
        w_slab = w_slab.at[l, :fan_out, :fan_in].set(w.T)
        b_slab = b_slab.at[l, :fan_out, 0].set(b.reshape(-1))
    return w_slab.astype(jnp.bfloat16), b_slab


@functools.partial(jax.jit, static_argnums=(3,))
def net_forward(x, w_slab, b_slab, dims):
    """x: [B, num_features] f32.  w_slab/b_slab: packed slabs from pack_params.
    dims: static tuple (num_features, 32, 64, 128, 64, 32, 8, 1)."""
    B, F = x.shape
    assert F == dims[0] and F <= _P
    n_layers = len(dims) - 1
    out_dim = dims[-1]

    dims_pad = _padded_dims(dims)
    f_pad = dims_pad[0]
    out_pad = dims_pad[-1]
    layer_shapes = tuple((dims_pad[i + 1], dims_pad[i]) for i in range(n_layers))

    tile_b, b_pad = _batch_tiling(B)
    grid = (b_pad // tile_b,)

    # Lane-dense transposed input slab [F_pad, B_pad] bf16 (fuses under jit).
    xt = jnp.zeros((f_pad, b_pad), jnp.bfloat16)
    xt = xt.at[:F, :B].set(x.astype(jnp.bfloat16).T)

    flops = 2 * b_pad * sum(o * i for o, i in layer_shapes)
    bytes_accessed = int(xt.size * 2 + w_slab.size * 2 + b_slab.size * 4
                         + out_pad * b_pad * 4)

    kernel = functools.partial(_mlp_kernel, layer_shapes=layer_shapes)

    out_t = pl.pallas_call(
        kernel,
        out_shape=jax.ShapeDtypeStruct((out_pad, b_pad), jnp.float32),
        grid=grid,
        in_specs=[
            pl.BlockSpec((f_pad, tile_b), lambda i: (0, i)),          # xT tile
            pl.BlockSpec((n_layers, _P, _P), lambda i: (0, 0, 0)),    # W^T slab (resident)
            pl.BlockSpec((n_layers, _P, 1), lambda i: (0, 0, 0)),     # bias slab (resident)
        ],
        out_specs=pl.BlockSpec((out_pad, tile_b), lambda i: (0, i)),
        compiler_params=pltpu.CompilerParams(
            dimension_semantics=("parallel",),
        ),
        cost_estimate=pl.CostEstimate(
            flops=flops, transcendentals=0, bytes_accessed=bytes_accessed
        ),
    )(xt, w_slab, b_slab)

    return out_t[:out_dim, :B].T


def init_params(num_features, key):
    """Deterministic init mirroring the nn.Linear shapes in Net.__init__."""
    dims = (num_features,) + _HIDDEN
    params = []
    for i in range(len(dims) - 1):
        fan_in, fan_out = dims[i], dims[i + 1]
        key, kw, kb = jax.random.split(key, 3)
        bound = 1.0 / float(fan_in) ** 0.5   # PyTorch default Linear init range
        w = jax.random.uniform(kw, (fan_in, fan_out), jnp.float32, -bound, bound)
        b = jax.random.uniform(kb, (1, fan_out), jnp.float32, -bound, bound)
        params.append((w, b))
    return params


def reference_forward(x, params):
    """Pure-JAX reference matching the kernel numerics (bf16 in, f32 accumulate)."""
    h = x.astype(jnp.bfloat16)
    for i, (w, b) in enumerate(params):
        acc = jnp.dot(h, w.astype(jnp.bfloat16),
                      preferred_element_type=jnp.float32) + b
        if i < len(params) - 1:
            h = jnp.maximum(acc, 0.0).astype(jnp.bfloat16)
        else:
            h = acc
    return h


if __name__ == "__main__":
    key = jax.random.PRNGKey(0)
    num_features = 16
    batch = 64

    kx, kp = jax.random.split(key)
    x = jax.random.normal(kx, (batch, num_features), dtype=jnp.float32)
    params = init_params(num_features, kp)

    # Packing is done ONCE here (init time), not per forward call.
    w_slab, b_slab = pack_params(params)
    dims = (num_features,) + _HIDDEN

    out = jax.block_until_ready(net_forward(x, w_slab, b_slab, dims))
    ref = reference_forward(x, params)

    assert out.shape == (batch, 1), out.shape
    assert jnp.allclose(out, ref, atol=1e-3, rtol=1e-3), "mismatch vs reference"

    print("KERNEL_OK")
</pallas_src>

<mosaic_0001>
module attributes {stable_mosaic.version = 11 : i64} {
  func.func @_mlp_kernel(%arg0: i32, %arg1: memref<16x128xbf16, #tpu.memory_space<vmem>>, %arg2: memref<7x128x128xbf16, #tpu.memory_space<vmem>>, %arg3: memref<7x128x1xf32, #tpu.memory_space<vmem>>, %arg4: memref<16x128xf32, #tpu.memory_space<vmem>>) attributes {dimension_semantics = [#tpu.dimension_semantics<parallel>], iteration_bounds = array<i64: 1>, scalar_prefetch = 0 : i64, scratch_operands = 0 : i64, tpu.core_type = #tpu.core_type<tc>, window_params = [{transform_indices = @transform_0, window_bounds = array<i64: 16, 128>}, {pipeline_mode = #tpu.pipeline_mode<synchronous>, transform_indices = @transform_1, window_bounds = array<i64: 7, 128, 128>}, {pipeline_mode = #tpu.pipeline_mode<synchronous>, transform_indices = @transform_2, window_bounds = array<i64: 7, 128, 1>}, {transform_indices = @transform_3, window_bounds = array<i64: 16, 128>}]} {
    %c0 = arith.constant 0 : index
    %c0_0 = arith.constant 0 : index
    %0 = vector.load %arg1[%c0, %c0_0] : memref<16x128xbf16, #tpu.memory_space<vmem>>, vector<16x128xbf16>
    %c0_1 = arith.constant 0 : index
    %c0_2 = arith.constant 0 : index
    %c0_3 = arith.constant 0 : index
    %1 = vector.load %arg2[%c0_1, %c0_2, %c0_3] : memref<7x128x128xbf16, #tpu.memory_space<vmem>>, vector<1x32x16xbf16>
    %2 = vector.shape_cast %1 : vector<1x32x16xbf16> to vector<32x16xbf16>
    %cst = arith.constant dense<0.000000e+00> : vector<32x128xf32>
    %3 = tpu.matmul %2, %0, %cst {dimension_numbers = #tpu.dot_dimension_numbers<[1], [0], [0], [1], [0, 0, 1, 1], [], []>} : vector<32x16xbf16>, vector<16x128xbf16>, vector<32x128xf32> -> vector<32x128xf32>
    %c0_4 = arith.constant 0 : index
    %c0_5 = arith.constant 0 : index
    %c0_6 = arith.constant 0 : index
    %4 = vector.load %arg3[%c0_4, %c0_5, %c0_6] : memref<7x128x1xf32, #tpu.memory_space<vmem>>, vector<1x32x1xf32>
    %5 = vector.shape_cast %4 : vector<1x32x1xf32> to vector<32x1xf32>
    %6 = vector.broadcast %5 : vector<32x1xf32> to vector<32x128xf32>
    %7 = arith.addf %3, %6 : vector<32x128xf32>
    %cst_7 = arith.constant 0.000000e+00 : f32
    %8 = vector.broadcast %cst_7 : f32 to vector<32x128xf32>
    %9 = arith.maximumf %7, %8 : vector<32x128xf32>
    %10 = arith.truncf %9 : vector<32x128xf32> to vector<32x128xbf16>
    %c1 = arith.constant 1 : index
    %c0_8 = arith.constant 0 : index
    %c0_9 = arith.constant 0 : index
    %11 = vector.load %arg2[%c1, %c0_8, %c0_9] : memref<7x128x128xbf16, #tpu.memory_space<vmem>>, vector<1x64x32xbf16>
    %12 = vector.shape_cast %11 : vector<1x64x32xbf16> to vector<64x32xbf16>
    %cst_10 = arith.constant dense<0.000000e+00> : vector<64x128xf32>
    %13 = tpu.matmul %12, %10, %cst_10 {dimension_numbers = #tpu.dot_dimension_numbers<[1], [0], [0], [1], [0, 0, 1, 1], [], []>} : vector<64x32xbf16>, vector<32x128xbf16>, vector<64x128xf32> -> vector<64x128xf32>
    %c1_11 = arith.constant 1 : index
    %c0_12 = arith.constant 0 : index
    %c0_13 = arith.constant 0 : index
    %14 = vector.load %arg3[%c1_11, %c0_12, %c0_13] : memref<7x128x1xf32, #tpu.memory_space<vmem>>, vector<1x64x1xf32>
    %15 = vector.shape_cast %14 : vector<1x64x1xf32> to vector<64x1xf32>
    %16 = vector.broadcast %15 : vector<64x1xf32> to vector<64x128xf32>
    %17 = arith.addf %13, %16 : vector<64x128xf32>
    %cst_14 = arith.constant 0.000000e+00 : f32
    %18 = vector.broadcast %cst_14 : f32 to vector<64x128xf32>
    %19 = arith.maximumf %17, %18 : vector<64x128xf32>
    %20 = arith.truncf %19 : vector<64x128xf32> to vector<64x128xbf16>
    %c2 = arith.constant 2 : index
    %c0_15 = arith.constant 0 : index
    %c0_16 = arith.constant 0 : index
    %21 = vector.load %arg2[%c2, %c0_15, %c0_16] : memref<7x128x128xbf16, #tpu.memory_space<vmem>>, vector<1x128x64xbf16>
    %22 = vector.shape_cast %21 : vector<1x128x64xbf16> to vector<128x64xbf16>
    %cst_17 = arith.constant dense<0.000000e+00> : vector<128x128xf32>
    %23 = tpu.matmul %22, %20, %cst_17 {dimension_numbers = #tpu.dot_dimension_numbers<[1], [0], [0], [1], [0, 0, 1, 1], [], []>} : vector<128x64xbf16>, vector<64x128xbf16>, vector<128x128xf32> -> vector<128x128xf32>
    %c2_18 = arith.constant 2 : index
    %c0_19 = arith.constant 0 : index
    %c0_20 = arith.constant 0 : index
    %24 = vector.load %arg3[%c2_18, %c0_19, %c0_20] : memref<7x128x1xf32, #tpu.memory_space<vmem>>, vector<1x128x1xf32>
    %25 = vector.shape_cast %24 : vector<1x128x1xf32> to vector<128x1xf32>
    %26 = vector.broadcast %25 : vector<128x1xf32> to vector<128x128xf32>
    %27 = arith.addf %23, %26 : vector<128x128xf32>
    %cst_21 = arith.constant 0.000000e+00 : f32
    %28 = vector.broadcast %cst_21 : f32 to vector<128x128xf32>
    %29 = arith.maximumf %27, %28 : vector<128x128xf32>
    %30 = arith.truncf %29 : vector<128x128xf32> to vector<128x128xbf16>
    %c3 = arith.constant 3 : index
    %c0_22 = arith.constant 0 : index
    %c0_23 = arith.constant 0 : index
    %31 = vector.load %arg2[%c3, %c0_22, %c0_23] : memref<7x128x128xbf16, #tpu.memory_space<vmem>>, vector<1x64x128xbf16>
    %32 = vector.shape_cast %31 : vector<1x64x128xbf16> to vector<64x128xbf16>
    %cst_24 = arith.constant dense<0.000000e+00> : vector<64x128xf32>
    %33 = tpu.matmul %32, %30, %cst_24 {dimension_numbers = #tpu.dot_dimension_numbers<[1], [0], [0], [1], [0, 0, 1, 1], [], []>} : vector<64x128xbf16>, vector<128x128xbf16>, vector<64x128xf32> -> vector<64x128xf32>
    %c3_25 = arith.constant 3 : index
    %c0_26 = arith.constant 0 : index
    %c0_27 = arith.constant 0 : index
    %34 = vector.load %arg3[%c3_25, %c0_26, %c0_27] : memref<7x128x1xf32, #tpu.memory_space<vmem>>, vector<1x64x1xf32>
    %35 = vector.shape_cast %34 : vector<1x64x1xf32> to vector<64x1xf32>
    %36 = vector.broadcast %35 : vector<64x1xf32> to vector<64x128xf32>
    %37 = arith.addf %33, %36 : vector<64x128xf32>
    %cst_28 = arith.constant 0.000000e+00 : f32
    %38 = vector.broadcast %cst_28 : f32 to vector<64x128xf32>
    %39 = arith.maximumf %37, %38 : vector<64x128xf32>
    %40 = arith.truncf %39 : vector<64x128xf32> to vector<64x128xbf16>
    %c4 = arith.constant 4 : index
    %c0_29 = arith.constant 0 : index
    %c0_30 = arith.constant 0 : index
    %41 = vector.load %arg2[%c4, %c0_29, %c0_30] : memref<7x128x128xbf16, #tpu.memory_space<vmem>>, vector<1x32x64xbf16>
    %42 = vector.shape_cast %41 : vector<1x32x64xbf16> to vector<32x64xbf16>
    %cst_31 = arith.constant dense<0.000000e+00> : vector<32x128xf32>
    %43 = tpu.matmul %42, %40, %cst_31 {dimension_numbers = #tpu.dot_dimension_numbers<[1], [0], [0], [1], [0, 0, 1, 1], [], []>} : vector<32x64xbf16>, vector<64x128xbf16>, vector<32x128xf32> -> vector<32x128xf32>
    %c4_32 = arith.constant 4 : index
    %c0_33 = arith.constant 0 : index
    %c0_34 = arith.constant 0 : index
    %44 = vector.load %arg3[%c4_32, %c0_33, %c0_34] : memref<7x128x1xf32, #tpu.memory_space<vmem>>, vector<1x32x1xf32>
    %45 = vector.shape_cast %44 : vector<1x32x1xf32> to vector<32x1xf32>
    %46 = vector.broadcast %45 : vector<32x1xf32> to vector<32x128xf32>
    %47 = arith.addf %43, %46 : vector<32x128xf32>
    %cst_35 = arith.constant 0.000000e+00 : f32
    %48 = vector.broadcast %cst_35 : f32 to vector<32x128xf32>
    %49 = arith.maximumf %47, %48 : vector<32x128xf32>
    %50 = arith.truncf %49 : vector<32x128xf32> to vector<32x128xbf16>
    %c5 = arith.constant 5 : index
    %c0_36 = arith.constant 0 : index
    %c0_37 = arith.constant 0 : index
    %51 = vector.load %arg2[%c5, %c0_36, %c0_37] : memref<7x128x128xbf16, #tpu.memory_space<vmem>>, vector<1x16x32xbf16>
    %52 = vector.shape_cast %51 : vector<1x16x32xbf16> to vector<16x32xbf16>
    %cst_38 = arith.constant dense<0.000000e+00> : vector<16x128xf32>
    %53 = tpu.matmul %52, %50, %cst_38 {dimension_numbers = #tpu.dot_dimension_numbers<[1], [0], [0], [1], [0, 0, 1, 1], [], []>} : vector<16x32xbf16>, vector<32x128xbf16>, vector<16x128xf32> -> vector<16x128xf32>
    %c5_39 = arith.constant 5 : index
    %c0_40 = arith.constant 0 : index
    %c0_41 = arith.constant 0 : index
    %54 = vector.load %arg3[%c5_39, %c0_40, %c0_41] : memref<7x128x1xf32, #tpu.memory_space<vmem>>, vector<1x16x1xf32>
    %55 = vector.shape_cast %54 : vector<1x16x1xf32> to vector<16x1xf32>
    %56 = vector.broadcast %55 : vector<16x1xf32> to vector<16x128xf32>
    %57 = arith.addf %53, %56 : vector<16x128xf32>
    %cst_42 = arith.constant 0.000000e+00 : f32
    %58 = vector.broadcast %cst_42 : f32 to vector<16x128xf32>
    %59 = arith.maximumf %57, %58 : vector<16x128xf32>
    %60 = arith.truncf %59 : vector<16x128xf32> to vector<16x128xbf16>
    %c6 = arith.constant 6 : index
    %c0_43 = arith.constant 0 : index
    %c0_44 = arith.constant 0 : index
    %61 = vector.load %arg2[%c6, %c0_43, %c0_44] : memref<7x128x128xbf16, #tpu.memory_space<vmem>>, vector<1x16x16xbf16>
    %62 = vector.shape_cast %61 : vector<1x16x16xbf16> to vector<16x16xbf16>
    %cst_45 = arith.constant dense<0.000000e+00> : vector<16x128xf32>
    %63 = tpu.matmul %62, %60, %cst_45 {dimension_numbers = #tpu.dot_dimension_numbers<[1], [0], [0], [1], [0, 0, 1, 1], [], []>} : vector<16x16xbf16>, vector<16x128xbf16>, vector<16x128xf32> -> vector<16x128xf32>
    %c6_46 = arith.constant 6 : index
    %c0_47 = arith.constant 0 : index
    %c0_48 = arith.constant 0 : index
    %64 = vector.load %arg3[%c6_46, %c0_47, %c0_48] : memref<7x128x1xf32, #tpu.memory_space<vmem>>, vector<1x16x1xf32>
    %65 = vector.shape_cast %64 : vector<1x16x1xf32> to vector<16x1xf32>
    %66 = vector.broadcast %65 : vector<16x1xf32> to vector<16x128xf32>
    %67 = arith.addf %63, %66 : vector<16x128xf32>
    %c0_49 = arith.constant 0 : index
    %c0_50 = arith.constant 0 : index
    %68 = vector.load %arg4[%c0_49, %c0_50] : memref<16x128xf32, #tpu.memory_space<vmem>>, vector<16x128xf32>
    tpu.vector_store %arg4[%c0_49, %c0_50], %67 {strides = array<i32>} : memref<16x128xf32, #tpu.memory_space<vmem>>, vector<16x128xf32>,
    return
  }
  func.func @transform_0(%arg0: i32) -> (i32, i32) {
    %c0_i32 = arith.constant 0 : i32
    %c0_i32_0 = arith.constant 0 : i32
    return %c0_i32, %arg0 : i32, i32
  }
  func.func @transform_1(%arg0: i32) -> (i32, i32, i32) {
    %c0_i32 = arith.constant 0 : i32
    %c0_i32_0 = arith.constant 0 : i32
    %c0_i32_1 = arith.constant 0 : i32
    %c0_i32_2 = arith.constant 0 : i32
    return %c0_i32, %c0_i32_0, %c0_i32_1 : i32, i32, i32
  }
  func.func @transform_2(%arg0: i32) -> (i32, i32, i32) {
    %c0_i32 = arith.constant 0 : i32
    %c0_i32_0 = arith.constant 0 : i32
    %c0_i32_1 = arith.constant 0 : i32
    %c0_i32_2 = arith.constant 0 : i32
    return %c0_i32, %c0_i32_0, %c0_i32_1 : i32, i32, i32
  }
  func.func @transform_3(%arg0: i32) -> (i32, i32) {
    %c0_i32 = arith.constant 0 : i32
    %c0_i32_0 = arith.constant 0 : i32
    return %c0_i32, %arg0 : i32, i32
  }
}

</mosaic_0001>

<bundles_post_ra>
// kernel: net_forward.1
= control target key start
LH: loop header
LB: loop body
LE: loop exit
PB: predicated region body
PF: predicated region fallthrough
CT: control target
= control target key end

     0   :  { %v1275_v1 = vmov 0   ;;  %vm61_vm0 = vcmask 130048   ;;  %vm201_vm1 = vcmask 261120   ;;  %vm445_vm2 = vcmask 523264   ;;  %s1523_s0 = inlined_call_operand.vmem [shape: bf16[16,128], index: 0, kind: input, shape index: {}]   ;;  %s1524_s2 = inlined_call_operand.vmem [shape: f32[7,128,1], index: 2, kind: input, shape index: {}]   ;;  %s1525_s1 = inlined_call_operand.vmem [shape: bf16[7,128,128], index: 1, kind: input, shape index: {}]   ;;  %s1526_s3 = inlined_call_operand.vmem [shape: f32[16,128], index: 3, kind: output, shape index: {}]  }
   0x1   :  { %v1252_v0 = vld [vmem:[%s1523_s0] sm:$0xff]   ;;  %1250 = vset.pattern.permute.xlu0 %v1275_v1  ;;  %1251 = vset.pattern.permute.xlu1 %v1275_v1  ;;  %v1254_v4 = vld [vmem:[%s1525_s1 + $0x8] sm:$0xff]   ;;  %v23_v5 = vld [vmem:[%s1524_s2 + $0x10] sm:$0xff]  ;;  %vm1277_vm3 = vmmov 0  }
   0x2   :  { %v21_v2 = vld [vmem:[%s1524_s2] sm:$0xff]  ;;  %1155 = vmatprep.subr.bf16.mxu0 %v1252_v0  ;;  %v22_v6 = vld [vmem:[%s1524_s2 + $0x8] sm:$0xff]  ;;  %37 = vperm.xlu1 %1251, %v23_v5   ;;  %v24_v7 = vld [vmem:[%s1524_s2 + $0x18] sm:$0xff] }
   0x3   :  { %27 = vperm.xlu0 %1250, %v21_v2   ;;  %v1253_v3 = vld [vmem:[%s1525_s1] sm:$0xff]   ;;  %1156 = vmatpush3.bf16.msra.mxu0 %v1252_v0  ;;  %v1004_v9 = vld [vmem:[%s1524_s2 + $0x88] sm:$0xff]  ;;  %v1005_v10 = vld [vmem:[%s1524_s2 + $0x90] sm:$0xff] }
   0x4   :  { %1157 = vmatprep.mubr.msk.bf16.mxu0 %vm61_vm0, %v1253_v3  ;;  %v1003_v8 = vld [vmem:[%s1524_s2 + $0x80] sm:$0xff]  ;;  %v1006_v11 = vld [vmem:[%s1524_s2 + $0x98] sm:$0xff]  ;;  %v1008_v13 = vld [vmem:[%s1524_s2 + $0xa8] sm:$0xff] }
   0x5   :  { %v1007_v12 = vld [vmem:[%s1524_s2 + $0xa0] sm:$0xff]  ;;  %v1009_v14 = vld [vmem:[%s1524_s2 + $0xb0] sm:$0xff]  ;;  %v1010_v15 = vld [vmem:[%s1524_s2 + $0xb8] sm:$0xff] }
   0x6   :  { %1158 = vmatmul.mubr.msk.bf16.vlgmr.msra.gmra.mrb[0].mxu0 %vm61_vm0, %v1254_v4  ;;  %42 = vperm.xlu1 %1251, %v24_v7   ;;  %v1035_v16 = vld [vmem:[%s1524_s2 + $0x100] sm:$0xff]  ;;  %v1036_v17 = vld [vmem:[%s1524_s2 + $0x108] sm:$0xff]  ;;  %v1037_v18 = vld [vmem:[%s1524_s2 + $0x110] sm:$0xff] }
   0x7   :  { %32 = vperm.xlu0 %1250, %v22_v6   ;;  %v1038_v19 = vld [vmem:[%s1524_s2 + $0x118] sm:$0xff]  ;;  %v1039_v20 = vld [vmem:[%s1524_s2 + $0x120] sm:$0xff]  ;;  %v1040_v21 = vld [vmem:[%s1524_s2 + $0x128] sm:$0xff] }
   0x8   :  { %v1041_v22 = vld [vmem:[%s1524_s2 + $0x130] sm:$0xff]  ;;  %v1042_v23 = vld [vmem:[%s1524_s2 + $0x138] sm:$0xff]  ;;  %v1043_v24 = vld [vmem:[%s1524_s2 + $0x140] sm:$0xff] }
   0x9   :  { %v1044_v25 = vld [vmem:[%s1524_s2 + $0x148] sm:$0xff]  ;;  %v1045_v26 = vld [vmem:[%s1524_s2 + $0x150] sm:$0xff]  ;;  %v1046_v27 = vld [vmem:[%s1524_s2 + $0x158] sm:$0xff] }
   0xa   :  { %148 = vperm.xlu1 %1251, %v1004_v9   ;;  %v1047_v28 = vld [vmem:[%s1524_s2 + $0x160] sm:$0xff]  ;;  %v1048_v29 = vld [vmem:[%s1524_s2 + $0x168] sm:$0xff]  ;;  %v1049_v30 = vld [vmem:[%s1524_s2 + $0x170] sm:$0xff] }
   0xb   :  { %143 = vperm.xlu0 %1250, %v1003_v8   ;;  %v1050_v31 = vld [vmem:[%s1524_s2 + $0x178] sm:$0xff]  ;;  %v1075_v32 = vld [vmem:[%s1524_s2 + $0x180] sm:$0xff]  ;;  %v1076_v33 = vld [vmem:[%s1524_s2 + $0x188] sm:$0xff] }
   0xc   :  { %v1077_v34 = vld [vmem:[%s1524_s2 + $0x190] sm:$0xff]  ;;  %v1078_v35 = vld [vmem:[%s1524_s2 + $0x198] sm:$0xff]  ;;  %v1079_v36 = vld [vmem:[%s1524_s2 + $0x1a0] sm:$0xff] }
   0xd   :  { %v1080_v37 = vld [vmem:[%s1524_s2 + $0x1a8] sm:$0xff]  ;;  %v1081_v38 = vld [vmem:[%s1524_s2 + $0x1b0] sm:$0xff]  ;;  %v1082_v39 = vld [vmem:[%s1524_s2 + $0x1b8] sm:$0xff] }
   0xe   :  { %158 = vperm.xlu1 %1251, %v1006_v11   ;;  %v1091_v40 = vld [vmem:[%s1524_s2 + $0x200] sm:$0xff]  ;;  %v1092_v41 = vld [vmem:[%s1524_s2 + $0x208] sm:$0xff]  ;;  %v1093_v42 = vld [vmem:[%s1524_s2 + $0x210] sm:$0xff] }
   0xf   :  { %153 = vperm.xlu0 %1250, %v1005_v10   ;;  %v1094_v43 = vld [vmem:[%s1524_s2 + $0x218] sm:$0xff]  ;;  %v1101_v44 = vld [vmem:[%s1524_s2 + $0x280] sm:$0xff]  ;;  %v1102_v45 = vld [vmem:[%s1524_s2 + $0x288] sm:$0xff] }
  0x10   :  { %v1107_v46 = vld [vmem:[%s1524_s2 + $0x300] sm:$0xff]  ;;  %v1108_v47 = vld [vmem:[%s1524_s2 + $0x308] sm:$0xff]  ;;  %v1257_v4 = vld [vmem:[%s1525_s1 + $0x50] sm:$0xff]  }
  0x11   :  { %v1255_v48 = vld [vmem:[%s1525_s1 + $0x40] sm:$0xff]   ;;  %v1256_v3 = vld [vmem:[%s1525_s1 + $0x48] sm:$0xff]   ;;  %v1258_v5 = vld [vmem:[%s1525_s1 + $0x58] sm:$0xff]  }
  0x12   :  { %168 = vperm.xlu1 %1251, %v1008_v13   ;;  %1165 = vmatprep.mubr.msk.bf16.mxu1 %vm201_vm1, %v1255_v48  ;;  %v1259_v6 = vld [vmem:[%s1525_s1 + $0x80] sm:$0xff]   ;;  %v1265_v48 = vld [vmem:[%s1525_s1 + $0xb0] sm:$0xff]  }
  0x13   :  { %163 = vperm.xlu0 %1250, %v1007_v12   ;;  %1181 = vmatprep.mubr.msk.bf16.mxu0 %vm445_vm2, %v1259_v6 }
  0x16   :  { %178 = vperm.xlu1 %1251, %v1010_v15  }
  0x17   :  { %173 = vperm.xlu0 %1250, %v1009_v14  }
  0x1a   :  { %332 = vperm.xlu1 %1251, %v1036_v17  }
  0x1b   :  { %327 = vperm.xlu0 %1250, %v1035_v16  }
  0x1e   :  { %342 = vperm.xlu1 %1251, %v1038_v19  }
  0x1f   :  { %337 = vperm.xlu0 %1250, %v1037_v18  }
  0x22   :  { %352 = vperm.xlu1 %1251, %v1040_v21  }
  0x23   :  { %347 = vperm.xlu0 %1250, %v1039_v20  }
  0x26   :  { %362 = vperm.xlu1 %1251, %v1042_v23  }
  0x27   :  { %357 = vperm.xlu0 %1250, %v1041_v22  }
  0x2a   :  { %372 = vperm.xlu1 %1251, %v1044_v25  }
  0x2b   :  { %367 = vperm.xlu0 %1250, %v1043_v24  }
  0x2e   :  { %382 = vperm.xlu1 %1251, %v1046_v27  }
  0x2f   :  { %377 = vperm.xlu0 %1250, %v1045_v26  }
  0x32   :  { %392 = vperm.xlu1 %1251, %v1048_v29  }
  0x33   :  { %387 = vperm.xlu0 %1250, %v1047_v28  }
  0x36   :  { %402 = vperm.xlu1 %1251, %v1050_v31  }
  0x37   :  { %397 = vperm.xlu0 %1250, %v1049_v30  }
  0x3a   :  { %616 = vperm.xlu1 %1251, %v1076_v33  }
  0x3b   :  { %611 = vperm.xlu0 %1250, %v1075_v32  }
  0x3e   :  { %626 = vperm.xlu1 %1251, %v1078_v35  }
  0x3f   :  { %621 = vperm.xlu0 %1250, %v1077_v34  }
  0x42   :  { %636 = vperm.xlu1 %1251, %v1080_v37  }
  0x43   :  { %631 = vperm.xlu0 %1250, %v1079_v36  }
  0x46   :  { %646 = vperm.xlu1 %1251, %v1082_v39  }
  0x47   :  { %641 = vperm.xlu0 %1250, %v1081_v38  }
  0x4a   :  { %767 = vperm.xlu1 %1251, %v1092_v41  }
  0x4b   :  { %762 = vperm.xlu0 %1250, %v1091_v40  }
  0x4e   :  { %777 = vperm.xlu1 %1251, %v1094_v43   ;;  %v1260_v43 = vld [vmem:[%s1525_s1 + $0x88] sm:$0xff]  }
  0x4f   :  { %772 = vperm.xlu0 %1250, %v1093_v42  }
  0x52   :  { %864 = vperm.xlu1 %1251, %v1102_v45   ;;  %v1262_v45 = vld [vmem:[%s1525_s1 + $0x98] sm:$0xff]  }
  0x53   :  { %859 = vperm.xlu0 %1250, %v1101_v44   ;;  %v1261_v44 = vld [vmem:[%s1525_s1 + $0x90] sm:$0xff]  }
  0x56   :  { %932 = vperm.xlu1 %1251, %v1108_v47   ;;  %v1264_v47 = vld [vmem:[%s1525_s1 + $0xa8] sm:$0xff]  }
  0x57   :  { %927 = vperm.xlu0 %1250, %v1107_v46   ;;  %v1263_v46 = vld [vmem:[%s1525_s1 + $0xa0] sm:$0xff]  }
  0x81   :  { %v38_v49 = vpop.permute.xlu1 %37 }
  0x82   :  { %v28_v50 = vpop.permute.xlu0 %27 }
  0x85   :  { %v43_v54 = vpop.permute.xlu1 %42 }
  0x86   :  { %v33_v57 = vpop.permute.xlu0 %32 }
  0x89   :  { %v149_v8 = vpop.permute.xlu1 %148 }
  0x8a   :  { %v144_v7 = vpop.permute.xlu0 %143 }
  0x8d   :  { %v159_v10 = vpop.permute.xlu1 %158 }
  0x8e   :  { %v154_v9 = vpop.permute.xlu0 %153 }
  0x91   :  { %v169_v19 = vpop.permute.xlu1 %168 }
  0x92   :  { %v164_v14 = vpop.permute.xlu0 %163 }
  0x95   :  { %v179_v31 = vpop.permute.xlu1 %178 }
  0x96   :  { %v174_v26 = vpop.permute.xlu0 %173 }
  0xd9   :  { %v1159_v51 = vpop.f32.mrb[0].mxu0 }
  0xda   :  { %v111_v52 = vadd.f32 %v1159_v51, %v38_v49  ;;  %v102_v53 = vpop.f32.mrb[1].mxu0  ;;  %v1266_v49 = vld [vmem:[%s1525_s1 + $0xb8] sm:$0xff]   ;;  %v328_v51 = vpop.permute.xlu0 %327 }
  0xdb   :  { %v103_v55 = vadd.f32 %v102_v53, %v28_v50  ;;  %v1160_v56 = vpop.f32.mrb[2].mxu0  ;;  %v1267_v50 = vld [vmem:[%s1525_s1 + $0xc0] sm:$0xff]  }
  0xdc   :  { %v114_v58 = vadd.f32 %v1160_v56, %v43_v54  ;;  %v105_v59 = vpop.f32.mrb[3].mxu0  ;;  %v119_v61 = vmax.f32 %v111_v52, 0.0  ;;  %v333_v52 = vpop.permute.xlu1 %332 }
  0xdd   :  { %v106_v60 = vadd.f32 %v105_v59, %v33_v57  ;;  %v117_v63 = vmax.f32 %v103_v55, 0.0 }
  0xde   :  { %v120_v62 = vmax.f32 %v114_v58, 0.0  ;;  %v338_v53 = vpop.permute.xlu0 %337 }
  0xdf   :  { %v118_v0 = vmax.f32 %v106_v60, 0.0 }
  0xe0   :  { %v122_v1 = vpack.c.bf16 %v120_v62, %v119_v61  ;;  %v343_v54 = vpop.permute.xlu1 %342 }
  0xe1   :  { %v121_v2 = vpack.c.bf16 %v118_v0, %v117_v63 }
  0xe2   :  { %v348_v55 = vpop.permute.xlu0 %347 }
  0xe3   :  { %1161 = vmatprep.subr.bf16.mxu1 %v121_v2 }
  0xe4   :  { %1162 = vmatpush3.bf16.msra.mxu1 %v121_v2  ;;  %v353_v56 = vpop.permute.xlu1 %352 }
  0xe5   :  { %1163 = vmatprep.subr.bf16.mxu1 %v122_v1 }
  0xe6   :  { %v358_v57 = vpop.permute.xlu0 %357 }
  0xe8   :  { %1164 = vmatpush3.bf16.msra.mxu1 %v122_v1  ;;  %v363_v61 = vpop.permute.xlu1 %362 }
  0xeb   :  { %1166 = vmatmul.mubr.msk.bf16.vlgmr.msra.gmra.mrb[0].mxu1 %vm201_vm1, %v1256_v3 }
  0xec   :  { %1169 = vmatprep.mubr.msk.bf16.mxu1 %vm201_vm1, %v1257_v4 }
  0xf3   :  { %1170 = vmatmul.mubr.msk.bf16.gmra.mrb[4].mxu1 %vm201_vm1, %v1258_v5  ;;  %v368_v5 = vpop.permute.xlu0 %367 }
  0xf4   :  { %1213 = vmatprep.mubr.bf16.mxu1 %v1267_v50 }
 0x1be   :  { %v1167_v11 = vpop.f32.mrb[0].mxu1 }
 0x1bf   :  { %v257_v12 = vadd.f32 %v1167_v11, %v154_v9  ;;  %v248_v13 = vpop.f32.mrb[1].mxu1  ;;  %v373_v9 = vpop.permute.xlu1 %372 }
 0x1c0   :  { %v249_v15 = vadd.f32 %v248_v13, %v144_v7  ;;  %v1168_v16 = vpop.f32.mrb[2].mxu1 }
 0x1c1   :  { %v260_v17 = vadd.f32 %v1168_v16, %v159_v10  ;;  %v251_v18 = vpop.f32.mrb[3].mxu1  ;;  %v281_v21 = vmax.f32 %v257_v12, 0.0 }
 0x1c2   :  { %v252_v20 = vadd.f32 %v251_v18, %v149_v8  ;;  %v279_v23 = vmax.f32 %v249_v15, 0.0  ;;  %v378_v18 = vpop.permute.xlu0 %377 }
 0x1c3   :  { %v282_v22 = vmax.f32 %v260_v17, 0.0 }
 0x1c4   :  { %v280_v24 = vmax.f32 %v252_v20, 0.0 }
 0x1c5   :  { %v288_v25 = vpack.c.bf16 %v282_v22, %v281_v21  ;;  %v383_v22 = vpop.permute.xlu1 %382 }
 0x1c6   :  { %v287_v27 = vpack.c.bf16 %v280_v24, %v279_v23  ;;  %v1171_v28 = vpop.f32.mrb[4].mxu1 }
 0x1c7   :  { %v273_v29 = vadd.f32 %v1171_v28, %v174_v26  ;;  %v264_v30 = vpop.f32.mrb[5].mxu1 }
 0x1c8   :  { %v265_v32 = vadd.f32 %v264_v30, %v164_v14  ;;  %v1172_v33 = vpop.f32.mrb[6].mxu1  ;;  %1173 = vmatprep.subr.bf16.mxu0 %v287_v27  ;;  %v388_v30 = vpop.permute.xlu0 %387 }
 0x1c9   :  { %v276_v34 = vadd.f32 %v1172_v33, %v179_v31  ;;  %v267_v35 = vpop.f32.mrb[7].mxu1  ;;  %1174 = vmatpush3.bf16.msra.mxu0 %v287_v27  ;;  %v285_v37 = vmax.f32 %v273_v29, 0.0 }
 0x1ca   :  { %v268_v36 = vadd.f32 %v267_v35, %v169_v19  ;;  %1175 = vmatprep.subr.bf16.mxu0 %v288_v25  ;;  %v283_v39 = vmax.f32 %v265_v32, 0.0  ;;  %v393_v35 = vpop.permute.xlu1 %392 }
 0x1cb   :  { %v286_v38 = vmax.f32 %v276_v34, 0.0 }
 0x1cc   :  { %v284_v40 = vmax.f32 %v268_v36, 0.0 }
 0x1cd   :  { %v290_v41 = vpack.c.bf16 %v286_v38, %v285_v37  ;;  %1176 = vmatpush3.bf16.msra.mxu0 %v288_v25 }
 0x1ce   :  { %v289_v42 = vpack.c.bf16 %v284_v40, %v283_v39 }
 0x1d0   :  { %1177 = vmatprep.subr.bf16.mxu0 %v289_v42 }
 0x1d1   :  { %1178 = vmatpush3.bf16.msra.mxu0 %v289_v42  ;;  %v398_v42 = vpop.permute.xlu0 %397 }
 0x1d2   :  { %1179 = vmatprep.subr.bf16.mxu0 %v290_v41 }
 0x1d5   :  { %1180 = vmatpush3.bf16.msra.mxu0 %v290_v41 }
 0x1d8   :  { %1182 = vmatmul.mubr.msk.bf16.vlgmr.msra.gmra.mrb[4].mxu0 %vm445_vm2, %v1260_v43 }
 0x1d9   :  { %1185 = vmatprep.mubr.msk.bf16.mxu0 %vm445_vm2, %v1261_v44 }
 0x1e0   :  { %1186 = vmatmul.mubr.msk.bf16.gmra.mrb[8].mxu0 %vm445_vm2, %v1262_v45 }
 0x1e1   :  { %1189 = vmatprep.mubr.msk.bf16.mxu0 %vm445_vm2, %v1263_v46 }
 0x1e8   :  { %1190 = vmatmul.mubr.msk.bf16.gmra.mrb[12].mxu0 %vm445_vm2, %v1264_v47  ;;  %v403_v47 = vpop.permute.xlu1 %402 }
 0x1e9   :  { %1193 = vmatprep.mubr.msk.bf16.mxu0 %vm445_vm2, %v1265_v48 }
 0x1f0   :  { %1194 = vmatmul.mubr.msk.bf16.gmra.mrb[16].mxu0 %vm445_vm2, %v1266_v49 }
 0x2ab   :  { %v1183_v58 = vpop.f32.mrb[4].mxu0 }
 0x2ac   :  { %v513_v59 = vadd.f32 %v1183_v58, %v338_v53  ;;  %v504_v60 = vpop.f32.mrb[5].mxu0 }
 0x2ad   :  { %v505_v62 = vadd.f32 %v504_v60, %v328_v51  ;;  %v1184_v63 = vpop.f32.mrb[6].mxu0  ;;  %v1269_v60 = vld [vmem:[%s1525_s1 + $0xd0] sm:$0xff]  }
 0x2ae   :  { %v516_v0 = vadd.f32 %v1184_v63, %v343_v54  ;;  %v507_v1 = vpop.f32.mrb[7].mxu0  ;;  %v569_v3 = vmax.f32 %v513_v59, 0.0  ;;  %v1268_v59 = vld [vmem:[%s1525_s1 + $0xc8] sm:$0xff]   ;;  %v612_v63 = vpop.permute.xlu0 %611 }
 0x2af   :  { %v508_v2 = vadd.f32 %v507_v1, %v333_v52  ;;  %v567_v6 = vmax.f32 %v505_v62, 0.0  ;;  %v1271_v62 = vld [vmem:[%s1525_s1 + $0x100] sm:$0xff]  }
 0x2b0   :  { %v570_v4 = vmax.f32 %v516_v0, 0.0  ;;  %1229 = vmatprep.mubr.msk.bf16.mxu0 %vm445_vm2, %v1271_v62  ;;  %v617_v0 = vpop.permute.xlu1 %616 }
 0x2b1   :  { %v568_v7 = vmax.f32 %v508_v2, 0.0 }
 0x2b2   :  { %v584_v8 = vpack.c.bf16 %v570_v4, %v569_v3  ;;  %v622_v1 = vpop.permute.xlu0 %621 }
 0x2b3   :  { %v583_v10 = vpack.c.bf16 %v568_v7, %v567_v6  ;;  %v1187_v11 = vpop.f32.mrb[8].mxu0 }
 0x2b4   :  { %v529_v12 = vadd.f32 %v1187_v11, %v358_v57  ;;  %v520_v13 = vpop.f32.mrb[9].mxu0  ;;  %v627_v2 = vpop.permute.xlu1 %626 }
 0x2b5   :  { %v521_v14 = vadd.f32 %v520_v13, %v348_v55  ;;  %v1188_v15 = vpop.f32.mrb[10].mxu0  ;;  %1197 = vmatprep.subr.bf16.mxu1 %v583_v10 }
 0x2b6   :  { %v532_v16 = vadd.f32 %v1188_v15, %v363_v61  ;;  %v523_v17 = vpop.f32.mrb[11].mxu0  ;;  %1198 = vmatpush3.bf16.msra.mxu1 %v583_v10  ;;  %v573_v20 = vmax.f32 %v529_v12, 0.0  ;;  %v1270_v61 = vld [vmem:[%s1525_s1 + $0xd8] sm:$0xff]   ;;  %v632_v6 = vpop.permute.xlu0 %631 }
 0x2b7   :  { %v524_v19 = vadd.f32 %v523_v17, %v353_v56  ;;  %1199 = vmatprep.subr.bf16.mxu1 %v584_v8  ;;  %v571_v23 = vmax.f32 %v521_v14, 0.0 }
 0x2b8   :  { %v574_v21 = vmax.f32 %v532_v16, 0.0  ;;  %v637_v11 = vpop.permute.xlu1 %636 }
 0x2b9   :  { %v572_v24 = vmax.f32 %v524_v19, 0.0 }
 0x2ba   :  { %v586_v25 = vpack.c.bf16 %v574_v21, %v573_v20  ;;  %1200 = vmatpush3.bf16.msra.mxu1 %v584_v8 }
 0x2bb   :  { %v585_v26 = vpack.c.bf16 %v572_v24, %v571_v23  ;;  %v1191_v27 = vpop.f32.mrb[12].mxu0 }
 0x2bc   :  { %v545_v28 = vadd.f32 %v1191_v27, %v378_v18  ;;  %v536_v29 = vpop.f32.mrb[13].mxu0  ;;  %v642_v18 = vpop.permute.xlu0 %641 }
 0x2bd   :  { %v537_v31 = vadd.f32 %v536_v29, %v368_v5  ;;  %v1192_v32 = vpop.f32.mrb[14].mxu0  ;;  %1201 = vmatprep.subr.bf16.mxu1 %v585_v26  ;;  %v647_v23 = vpop.permute.xlu1 %646 }
 0x2be   :  { %v548_v33 = vadd.f32 %v1192_v32, %v383_v22  ;;  %v539_v34 = vpop.f32.mrb[15].mxu0  ;;  %1202 = vmatpush3.bf16.msra.mxu1 %v585_v26  ;;  %v577_v37 = vmax.f32 %v545_v28, 0.0 }
 0x2bf   :  { %v540_v36 = vadd.f32 %v539_v34, %v373_v9  ;;  %1203 = vmatprep.subr.bf16.mxu1 %v586_v25  ;;  %v575_v39 = vmax.f32 %v537_v31, 0.0 }
 0x2c0   :  { %v578_v38 = vmax.f32 %v548_v33, 0.0 }
 0x2c1   :  { %v576_v40 = vmax.f32 %v540_v36, 0.0  ;;  %v1276_v36 = vmov 0.0  }
 0x2c2   :  { %v588_v41 = vpack.c.bf16 %v578_v38, %v577_v37  ;;  %1204 = vmatpush3.bf16.msra.mxu1 %v586_v25  ;;  %v763_v37 = vpop.permute.xlu0 %762  ;;  %v768_v38 = vpop.permute.xlu1 %767 }
 0x2c3   :  { %v587_v43 = vpack.c.bf16 %v576_v40, %v575_v39  ;;  %v1195_v44 = vpop.f32.mrb[16].mxu0 }
 0x2c4   :  { %v561_v45 = vadd.f32 %v1195_v44, %v398_v42  ;;  %v552_v46 = vpop.f32.mrb[17].mxu0 }
 0x2c5   :  { %v553_v48 = vadd.f32 %v552_v46, %v388_v30  ;;  %v1196_v49 = vpop.f32.mrb[18].mxu0  ;;  %1205 = vmatprep.subr.bf16.mxu1 %v587_v43 }
 0x2c6   :  { %v564_v50 = vadd.f32 %v1196_v49, %v403_v47  ;;  %v555_v51 = vpop.f32.mrb[19].mxu0  ;;  %1206 = vmatpush3.bf16.msra.mxu1 %v587_v43  ;;  %v581_v53 = vmax.f32 %v561_v45, 0.0  ;;  %v773_v39 = vpop.permute.xlu0 %772 }
 0x2c7   :  { %v556_v52 = vadd.f32 %v555_v51, %v393_v35  ;;  %1207 = vmatprep.subr.bf16.mxu1 %v588_v41  ;;  %v579_v55 = vmax.f32 %v553_v48, 0.0  ;;  %v1272_v35 = vld [vmem:[%s1525_s1 + $0x108] sm:$0xff]   ;;  %v778_v43 = vpop.permute.xlu1 %777 }
 0x2c8   :  { %v582_v54 = vmax.f32 %v564_v50, 0.0 }
 0x2c9   :  { %v580_v56 = vmax.f32 %v556_v52, 0.0 }
 0x2ca   :  { %v590_v57 = vpack.c.bf16 %v582_v54, %v581_v53  ;;  %1208 = vmatpush3.bf16.msra.mxu1 %v588_v41 }
 0x2cb   :  { %v589_v58 = vpack.c.bf16 %v580_v56, %v579_v55  ;;  %v1273_v55 = vld [vmem:[%s1525_s1 + $0x140] sm:$0xff]   ;;  %v860_v56 = vpop.permute.xlu0 %859 }
 0x2cd   :  { %1209 = vmatprep.subr.bf16.mxu1 %v589_v58 }
 0x2ce   :  { %1210 = vmatpush3.bf16.msra.mxu1 %v589_v58 }
 0x2cf   :  { %1211 = vmatprep.subr.bf16.mxu1 %v590_v57 }
 0x2d2   :  { %1212 = vmatpush3.bf16.msra.mxu1 %v590_v57 }
 0x2d3   :  { %1233 = vmatprep.subr.bf16.mxu1 %v1276_v36 }
 0x2d5   :  { %1214 = vmatmul.mubr.bf16.vlgmr.msra.gmra.mrb[8].mxu1 %v1268_v59 }
 0x2d6   :  { %1217 = vmatprep.mubr.bf16.mxu1 %v1269_v60  ;;  %v865_v60 = vpop.permute.xlu1 %864 }
 0x2dd   :  { %1218 = vmatmul.mubr.bf16.gmra.mrb[12].mxu1 %v1270_v61 }
 0x2de   :  { %1237 = vmatprep.mubr.msk.bf16.mxu1 %vm1277_vm3, %v1276_v36 }
 0x3a8   :  { %v1215_v3 = vpop.f32.mrb[8].mxu1 }
 0x3a9   :  { %v716_v4 = vadd.f32 %v1215_v3, %v622_v1  ;;  %v707_v5 = vpop.f32.mrb[9].mxu1  ;;  %v1274_v3 = vld [vmem:[%s1525_s1 + $0x180] sm:$0xff]  }
 0x3aa   :  { %v708_v7 = vadd.f32 %v707_v5, %v612_v63  ;;  %v1216_v8 = vpop.f32.mrb[10].mxu1 }
 0x3ab   :  { %v719_v9 = vadd.f32 %v1216_v8, %v627_v2  ;;  %v710_v10 = vpop.f32.mrb[11].mxu1  ;;  %v740_v13 = vmax.f32 %v716_v4, 0.0  ;;  %v928_v4 = vpop.permute.xlu0 %927 }
 0x3ac   :  { %v711_v12 = vadd.f32 %v710_v10, %v617_v0  ;;  %v738_v15 = vmax.f32 %v708_v7, 0.0  ;;  %v933_v8 = vpop.permute.xlu1 %932 }
 0x3ad   :  { %v741_v14 = vmax.f32 %v719_v9, 0.0 }
 0x3ae   :  { %v739_v16 = vmax.f32 %v711_v12, 0.0 }
 0x3af   :  { %v747_v17 = vpack.c.bf16 %v741_v14, %v740_v13 }
 0x3b0   :  { %v746_v19 = vpack.c.bf16 %v739_v16, %v738_v15  ;;  %v1219_v20 = vpop.f32.mrb[12].mxu1 }
 0x3b1   :  { %v732_v21 = vadd.f32 %v1219_v20, %v642_v18  ;;  %v723_v22 = vpop.f32.mrb[13].mxu1 }
 0x3b2   :  { %v724_v24 = vadd.f32 %v723_v22, %v632_v6  ;;  %v1220_v25 = vpop.f32.mrb[14].mxu1  ;;  %1221 = vmatprep.subr.bf16.mxu0 %v746_v19 }
 0x3b3   :  { %v735_v26 = vadd.f32 %v1220_v25, %v647_v23  ;;  %v726_v27 = vpop.f32.mrb[15].mxu1  ;;  %1222 = vmatpush3.bf16.msra.mxu0 %v746_v19  ;;  %v744_v29 = vmax.f32 %v732_v21, 0.0 }
 0x3b4   :  { %v727_v28 = vadd.f32 %v726_v27, %v637_v11  ;;  %1223 = vmatprep.subr.bf16.mxu0 %v747_v17  ;;  %v742_v31 = vmax.f32 %v724_v24, 0.0 }
 0x3b5   :  { %v745_v30 = vmax.f32 %v735_v26, 0.0 }
 0x3b6   :  { %v743_v32 = vmax.f32 %v727_v28, 0.0 }
 0x3b7   :  { %v749_v33 = vpack.c.bf16 %v745_v30, %v744_v29  ;;  %1224 = vmatpush3.bf16.msra.mxu0 %v747_v17 }
 0x3b8   :  { %v748_v34 = vpack.c.bf16 %v743_v32, %v742_v31 }
 0x3ba   :  { %1225 = vmatprep.subr.bf16.mxu0 %v748_v34 }
 0x3bb   :  { %1226 = vmatpush3.bf16.msra.mxu0 %v748_v34 }
 0x3bc   :  { %1227 = vmatprep.subr.bf16.mxu0 %v749_v33 }
 0x3bf   :  { %1228 = vmatpush3.bf16.msra.mxu0 %v749_v33 }
 0x3c0   :  { %1241 = vmatprep.subr.bf16.mxu0 %v1276_v36 }
 0x3c2   :  { %1230 = vmatmul.mubr.msk.bf16.vlgmr.msra.gmra.mrb[20].mxu0 %vm445_vm2, %v1272_v35 }
 0x3c3   :  { %1243 = vmatprep.mubr.msk.bf16.mxu0 %vm1277_vm3, %v1276_v36 }
 0x495   :  { %v1231_v40 = vpop.f32.mrb[20].mxu0 }
 0x496   :  { %v839_v41 = vadd.f32 %v1231_v40, %v773_v39  ;;  %v830_v42 = vpop.f32.mrb[21].mxu0 }
 0x497   :  { %v831_v44 = vadd.f32 %v830_v42, %v763_v37  ;;  %v1232_v45 = vpop.f32.mrb[22].mxu0 }
 0x498   :  { %v842_v46 = vadd.f32 %v1232_v45, %v778_v43  ;;  %v833_v47 = vpop.f32.mrb[23].mxu0  ;;  %v847_v49 = vmax.f32 %v839_v41, 0.0 }
 0x499   :  { %v834_v48 = vadd.f32 %v833_v47, %v768_v38  ;;  %v845_v51 = vmax.f32 %v831_v44, 0.0 }
 0x49a   :  { %v848_v50 = vmax.f32 %v842_v46, 0.0 }
 0x49b   :  { %v846_v52 = vmax.f32 %v834_v48, 0.0 }
 0x49c   :  { %v850_v53 = vpack.c.bf16 %v848_v50, %v847_v49 }
 0x49d   :  { %v849_v54 = vpack.c.bf16 %v846_v52, %v845_v51 }
 0x49f   :  { %1234 = vmatpush3.bf16.msra.mxu1 %v849_v54 }
 0x4a0   :  { %1235 = vmatprep.subr.bf16.mxu1 %v1276_v36 }
 0x4a3   :  { %1236 = vmatpush3.bf16.msra.mxu1 %v850_v53 }
 0x4a6   :  { %1238 = vmatmul.mubr.msk.bf16.vlgmr.msra.gmra.mrb[16].mxu1 %vm201_vm1, %v1273_v55 }
 0x579   :  { %v909_v57 = vpop.f32.mrb[16].mxu1 }
 0x57a   :  { %v910_v58 = vadd.f32 %v909_v57, %v860_v56  ;;  %v1239_v59 = vpop.f32.mrb[17].mxu1 }
 0x57b   :  { %v912_v61 = vpop.f32.mrb[18].mxu1 }
 0x57c   :  { %v913_v62 = vadd.f32 %v912_v61, %v865_v60  ;;  %v1240_v63 = vpop.f32.mrb[19].mxu1  ;;  %v916_v0 = vmax.f32 %v910_v58, 0.0 }
 0x57e   :  { %v917_v1 = vmax.f32 %v913_v62, 0.0 }
 0x580   :  { %v918_v2 = vpack.c.bf16 %v917_v1, %v916_v0 }
 0x582   :  { %1242 = vmatpush3.bf16.msra.mxu0 %v918_v2 }
 0x585   :  { %1244 = vmatmul.mubr.msk.bf16.vlgmr.msra.gmra.mrb[24].mxu0 %vm61_vm0, %v1274_v3 }
 0x658   :  { %v977_v5 = vpop.f32.mrb[24].mxu0 }
 0x659   :  { %v978_v6 = vadd.f32 %v977_v5, %v928_v4  ;;  %v1245_v7 = vpop.f32.mrb[25].mxu0 }
 0x65a   :  { %v980_v9 = vpop.f32.mrb[26].mxu0 }
 0x65b   :  { %984 = vst [vmem:[%s1526_s3] sm:$0xff] %v978_v6  ;;  %v981_v10 = vadd.f32 %v980_v9, %v933_v8  ;;  %v1246_v11 = vpop.f32.mrb[27].mxu0 }
 0x65d   :  { %985 = vst [vmem:[%s1526_s3 + $0x8] sm:$0xff] %v981_v10 }

</bundles_post_ra>
